<compile_context>
chip_gen: v7x
topology: tpu7x:2x2x1
jax: 0.10.0
libtpu: 0.0.40
codegen_flags: <defaults>
</compile_context>

<pallas_src>
import functools

import jax
import jax.numpy as jnp
from jax.experimental import pallas as pl
from jax.experimental.pallas import tpu as pltpu

LN_EPS = 1e-5
N_TYPE = 3


def _round_up(a, b):
    return (a + b - 1) // b * b


# --------------------------------------------------------------------------------------
# Kernel: one row tile -> packed [tm, 2A] output (mean || log_std), 4 MXU passes
# --------------------------------------------------------------------------------------
def action_head_kernel(x_ref, w1a_ref, savg_ref, eps_ref, sbm_ref, beta_ref, w2f_ref,
                       out_ref, *, H, A):
    H6 = 6 * H
    xa = x_ref[...]                                         # [tm, H+13] = [x | mask x4 | 1]

    # Pass 1: first layer; LayerNorm centering + first-layer bias folded into w1a.
    hc = jnp.dot(xa, w1a_ref[...], preferred_element_type=jnp.float32)         # [tm, 6H]

    # Pass 2: per-segment variance (hc is mean-centred per segment); cols 6:13 are zero.
    seg = jnp.dot(hc * hc, savg_ref[...], preferred_element_type=jnp.float32)  # [tm, 13]

    # Mask folded into the inverse std (cols 0:6); cols 6:12 keep the raw mask
    # (rsqrt(0 + 1) = 1) and col 12 keeps the constant-1 feature.
    l = xa[:, H:].astype(jnp.float32) * jax.lax.rsqrt(seg + eps_ref[...])      # [tm, 13]

    # Pass 3: one broadcast pass ->
    #   [ masked gamma*invstd per lane (6H) | masked 2nd-layer bias + leak correction (2A) ]
    b = jnp.dot(l, sbm_ref[...], preferred_element_type=jnp.float32)           # [tm, 6H+2A]

    h = jnp.maximum(hc * b[:, :H6] + beta_ref[...], 0.0)                       # LN affine + ReLU

    # Pass 4: block-diagonal second layer emits mean || log_std in one tile.
    out_ref[...] = (jnp.dot(h.astype(w2f_ref.dtype), w2f_ref[...],
                            preferred_element_type=jnp.float32) + b[:, H6:])


# --------------------------------------------------------------------------------------
# Parameter packing (wrapper-side, plain JAX)
# --------------------------------------------------------------------------------------
def pack_params(params, *, param_dtype=jnp.float32):
    """Fold the 12 per-branch tensors into 6 packed constants for the fused kernel.

    NOTE: LayerNorm centering is folded into W1a (W1 @ (I - P)); exact in f32.  With
    param_dtype=bfloat16 a tiny per-segment mean residual leaks into the variance
    estimate -- acceptable for inference, keep f32 for bit-exact parity.
    """
    H = params["w1_mean"].shape[-1]
    A = params["w2_mean"].shape[-1]
    H6 = 6 * H
    f32 = jnp.float32

    def cat(name):          # segment order: mean_0, mean_1, mean_2, std_0, std_1, std_2
        return jnp.concatenate(
            [params[name + "_mean"][i] for i in range(N_TYPE)]
            + [params[name + "_std"][i] for i in range(N_TYPE)], axis=-1).astype(f32)

    w1_all, b1_all = cat("w1"), cat("b1")                   # [H, 6H], [1, 6H]
    g_all, be_all = cat("g"), cat("beta")                   # [1, 6H], [1, 6H]

    seg_id = jnp.repeat(jnp.arange(6), H)                                       # [6H]
    sbc = (jnp.arange(6)[:, None] == seg_id[None, :]).astype(f32)               # [6, 6H]
    savg = sbc.T / H                                                            # [6H, 6]
    center = jnp.eye(H6, dtype=f32) - savg @ sbc                                # I - P

    w1c = w1_all @ center
    b1c = b1_all @ center
    # x_aug lane layout: [x (H) | mask x4 (12) | 1 (1)]  -> zero rows for mask lanes,
    # b1c row for the ones lane (bias rides the first matmul for free).
    w1a = jnp.concatenate([w1c, jnp.zeros((12, H6), f32), b1c], axis=0)         # [H+13, 6H]

    savg13 = jnp.concatenate([savg, jnp.zeros((H6, 7), f32)], axis=1)           # [6H, 13]
    epsrow = jnp.concatenate([jnp.full((1, 6), LN_EPS, f32),
                              jnp.ones((1, 7), f32)], axis=1)                   # [1, 13]

    # Block-diagonal second layer: one matmul emits mean || log_std.
    zw = jnp.zeros((3 * H, A), f32)
    w2m = jnp.concatenate([params["w2_mean"][i] for i in range(N_TYPE)], axis=0).astype(f32)
    w2s = jnp.concatenate([params["w2_std"][i] for i in range(N_TYPE)], axis=0).astype(f32)
    w2f = jnp.concatenate([jnp.concatenate([w2m, zw], axis=1),
                           jnp.concatenate([zw, w2s], axis=1)], axis=0)         # [6H, 2A]

    zb = jnp.zeros((N_TYPE, A), f32)
    b2m = jnp.concatenate([params["b2_mean"][i] for i in range(N_TYPE)], axis=0).astype(f32)
    b2s = jnp.concatenate([params["b2_std"][i] for i in range(N_TYPE)], axis=0).astype(f32)
    b2 = jnp.concatenate([jnp.concatenate([b2m, zb], axis=1),
                          jnp.concatenate([zb, b2s], axis=1)], axis=0)          # [6, 2A]

    # Leak correction: with the mask folded into the scale, a masked segment still
    # contributes relu(beta_seg) @ W2_seg.  K[j] is that constant (in its output columns);
    # add it to the masked bias and subtract the unconditional sum once.
    k_rows = (sbc * jax.nn.relu(be_all)) @ w2f                                  # [6, 2A]
    b2p = b2 + k_rows
    corr = -jnp.sum(k_rows, axis=0, keepdims=True)                              # [1, 2A]

    # Combined broadcast matrix: rows 0:6 -> gamma*(mask*invstd) per lane,
    # rows 6:12 -> masked second-layer bias, row 12 -> constant correction.
    sbm = jnp.concatenate([
        jnp.concatenate([sbc * g_all, jnp.zeros((6, 2 * A), f32)], axis=1),
        jnp.concatenate([jnp.zeros((6, H6), f32), b2p], axis=1),
        jnp.concatenate([jnp.zeros((1, H6), f32), corr], axis=1),
    ], axis=0)                                                                  # [13, 6H+2A]

    return (w1a.astype(param_dtype), savg13, epsrow, sbm, be_all, w2f.astype(param_dtype))


# --------------------------------------------------------------------------------------
# Forward wrapper
# --------------------------------------------------------------------------------------
def action_head_forward(x, valid, agent_type, params, *, tm=None, param_dtype=jnp.float32):
    """x: [nb, na, H] f32, valid: [nb, na] bool, agent_type: [nb, na, 3] bool one-hot."""
    nb, na, H = x.shape
    A = params["w2_mean"].shape[-1]
    N = nb * na
    H6 = 6 * H

    # Large MXU-friendly tiles: per-grid-step fixed cost ~0.35 us, so keep the grid short.
    # Single step for small/medium N (no forced 2-way split on single-TC v5e/v6e);
    # 2048-row 128-aligned tiles otherwise (~4 MB double-buffered VMEM -> fits every gen,
    # including v5e's 16 MiB scoped default).  Grid axis is "parallel" for v7x megacore.
    if tm is None:
        tm = max(8, _round_up(N, 8)) if N <= 2048 else 2048
    n_pad = _round_up(N, tm)

    # Pack mask (x4) and a constant-1 column into x's unused lanes: the (tm, H) block pads
    # to 128 lanes anyway, so the extra 13 columns are free and remove a second input stream.
    x2 = jnp.zeros((n_pad, H), param_dtype).at[:N].set(x.reshape(N, H).astype(param_dtype))
    mask3 = jnp.logical_and(agent_type, valid[..., None]).reshape(N, N_TYPE)
    m3 = jnp.zeros((n_pad, N_TYPE), param_dtype).at[:N].set(mask3.astype(param_dtype))
    ones = jnp.ones((n_pad, 1), param_dtype)
    x_aug = jnp.concatenate([x2, jnp.tile(m3, (1, 4)), ones], axis=-1)          # [n_pad, H+13]

    packed = pack_params(params, param_dtype=param_dtype)

    def const_spec(p):
        return pl.BlockSpec(p.shape, lambda i, _nd=p.ndim: (0,) * _nd)

    flops = 2 * n_pad * ((H + 13) * H6 + H6 * 13 + 13 * (H6 + 2 * A) + H6 * 2 * A)
    param_bytes = sum(int(p.size) * jnp.dtype(p.dtype).itemsize for p in packed)
    bytes_accessed = (n_pad * 128 * jnp.dtype(param_dtype).itemsize   # lane-padded x_aug
                      + n_pad * 128 * 4                               # lane-padded output
                      + param_bytes)
    cost = pl.CostEstimate(flops=int(flops), transcendentals=int(13 * n_pad),
                           bytes_accessed=int(bytes_accessed))

    kernel = functools.partial(action_head_kernel, H=H, A=A)
    out = pl.pallas_call(
        kernel,
        out_shape=jax.ShapeDtypeStruct((n_pad, 2 * A), jnp.float32),
        grid=(n_pad // tm,),
        in_specs=[pl.BlockSpec((tm, H + 13), lambda i: (i, 0))]
                 + [const_spec(p) for p in packed],
        out_specs=pl.BlockSpec((tm, 2 * A), lambda i: (i, 0)),
        compiler_params=pltpu.CompilerParams(dimension_semantics=("parallel",)),
        cost_estimate=cost,
    )(x_aug, *packed)

    mean = out[:N, :A].reshape(nb, na, A)
    log_std = out[:N, A:].reshape(nb, na, A)
    # DiagGaussian glue: covariance_matrix = diag(exp(log_std)^2)
    std = jnp.exp(log_std)
    cov = (std ** 2)[..., :, None] * jnp.eye(A, dtype=std.dtype)
    return mean, log_std, cov


# --------------------------------------------------------------------------------------
# Params + pure-JAX reference (mirrors PyTorch forward, branch_type=True, log_std=None)
# --------------------------------------------------------------------------------------
def init_params(key, H, A):
    ks = jax.random.split(key, 10)

    def lin(k, fan_in, shape):
        bound = 1.0 / jnp.sqrt(jnp.float32(fan_in))
        return jax.random.uniform(k, shape, jnp.float32, -bound, bound)

    p = {}
    p["w1_mean"] = lin(ks[0], H, (N_TYPE, H, H))
    p["b1_mean"] = lin(ks[1], H, (N_TYPE, 1, H))
    p["w2_mean"] = lin(ks[2], H, (N_TYPE, H, A))
    p["b2_mean"] = lin(ks[3], H, (N_TYPE, 1, A))
    p["w1_std"] = lin(ks[4], H, (N_TYPE, H, H))
    p["b1_std"] = lin(ks[5], H, (N_TYPE, 1, H))
    p["w2_std"] = lin(ks[6], H, (N_TYPE, H, A))
    p["b2_std"] = lin(ks[7], H, (N_TYPE, 1, A))
    # LayerNorm affine: PyTorch default is ones/zeros; randomized here to exercise the
    # gamma-fold and the masked-beta leakage-correction paths of the kernel.
    p["g_mean"] = 1.0 + 0.1 * jax.random.normal(ks[8], (N_TYPE, 1, H), jnp.float32)
    p["beta_mean"] = 0.2 * jax.random.normal(ks[9], (N_TYPE, 1, H), jnp.float32)
    p["g_std"] = 1.0 - 0.1 * jax.random.normal(ks[8], (N_TYPE, 1, H), jnp.float32)
    p["beta_std"] = -0.2 * jax.random.normal(ks[9], (N_TYPE, 1, H), jnp.float32)
    return p


def ref_forward(x, valid, agent_type, p):
    mask = jnp.logical_and(agent_type, valid[..., None])      # [nb, na, 3]

    def mlp(x, w1, b1, g, be, w2, b2, m):
        h = x @ w1 + b1
        mu = h.mean(-1, keepdims=True)
        var = ((h - mu) ** 2).mean(-1, keepdims=True)
        h = (h - mu) / jnp.sqrt(var + LN_EPS) * g + be
        h = jax.nn.relu(h)
        o = h @ w2 + b2
        return jnp.where(m[..., None], o, 0.0)

    mean = 0.0
    log_std = 0.0
    for i in range(N_TYPE):
        mean = mean + mlp(x, p["w1_mean"][i], p["b1_mean"][i], p["g_mean"][i],
                          p["beta_mean"][i], p["w2_mean"][i], p["b2_mean"][i], mask[:, :, i])
        log_std = log_std + mlp(x, p["w1_std"][i], p["b1_std"][i], p["g_std"][i],
                                p["beta_std"][i], p["w2_std"][i], p["b2_std"][i], mask[:, :, i])
    return mean, log_std


if __name__ == "__main__":
    n_batch, n_agent, hidden_dim, action_dim = 2, 8, 32, 2

    key = jax.random.PRNGKey(0)
    kx, kv, kt, kp = jax.random.split(key, 4)

    x = jax.random.normal(kx, (n_batch, n_agent, hidden_dim), jnp.float32)
    valid = jax.random.bernoulli(kv, 0.8, (n_batch, n_agent))
    types = jax.random.randint(kt, (n_batch, n_agent), 0, N_TYPE)
    agent_type = (jax.nn.one_hot(types, N_TYPE) > 0.5)        # bool one-hot [nb, na, 3]

    params = init_params(kp, hidden_dim, action_dim)

    mean, log_std, cov = action_head_forward(x, valid, agent_type, params)
    jax.block_until_ready((mean, log_std, cov))

    # correctness check against the pure-JAX reference (f32, tight tolerance)
    mean_ref, log_std_ref = ref_forward(x, valid, agent_type, params)
    assert jnp.allclose(mean, mean_ref, atol=1e-4, rtol=1e-4)
    assert jnp.allclose(log_std, log_std_ref, atol=1e-4, rtol=1e-4)

    print("KERNEL_OK")
</pallas_src>

<mosaic_0001>
module attributes {stable_mosaic.version = 11 : i64} {
  func.func @action_head_kernel(%arg0: i32, %arg1: memref<16x45xf32, #tpu.memory_space<vmem>>, %arg2: memref<45x192xf32, #tpu.memory_space<vmem>>, %arg3: memref<192x13xf32, #tpu.memory_space<vmem>>, %arg4: memref<1x13xf32, #tpu.memory_space<vmem>>, %arg5: memref<13x196xf32, #tpu.memory_space<vmem>>, %arg6: memref<1x192xf32, #tpu.memory_space<vmem>>, %arg7: memref<192x4xf32, #tpu.memory_space<vmem>>, %arg8: memref<16x4xf32, #tpu.memory_space<vmem>>) attributes {dimension_semantics = [#tpu.dimension_semantics<parallel>], iteration_bounds = array<i64: 1>, scalar_prefetch = 0 : i64, scratch_operands = 0 : i64, tpu.core_type = #tpu.core_type<tc>, window_params = [{transform_indices = @transform_0, window_bounds = array<i64: 16, 45>}, {pipeline_mode = #tpu.pipeline_mode<synchronous>, transform_indices = @transform_1, window_bounds = array<i64: 45, 192>}, {pipeline_mode = #tpu.pipeline_mode<synchronous>, transform_indices = @transform_2, window_bounds = array<i64: 192, 13>}, {pipeline_mode = #tpu.pipeline_mode<synchronous>, transform_indices = @transform_3, window_bounds = array<i64: 1, 13>}, {pipeline_mode = #tpu.pipeline_mode<synchronous>, transform_indices = @transform_4, window_bounds = array<i64: 13, 196>}, {pipeline_mode = #tpu.pipeline_mode<synchronous>, transform_indices = @transform_5, window_bounds = array<i64: 1, 192>}, {pipeline_mode = #tpu.pipeline_mode<synchronous>, transform_indices = @transform_6, window_bounds = array<i64: 192, 4>}, {transform_indices = @transform_7, window_bounds = array<i64: 16, 4>}]} {
    %c0 = arith.constant 0 : index
    %c0_0 = arith.constant 0 : index
    %0 = vector.load %arg1[%c0, %c0_0] : memref<16x45xf32, #tpu.memory_space<vmem>>, vector<16x45xf32>
    %c0_1 = arith.constant 0 : index
    %c0_2 = arith.constant 0 : index
    %1 = vector.load %arg2[%c0_1, %c0_2] : memref<45x192xf32, #tpu.memory_space<vmem>>, vector<45x192xf32>
    %cst = arith.constant dense<0.000000e+00> : vector<16x192xf32>
    %2 = tpu.matmul %0, %1, %cst {dimension_numbers = #tpu.dot_dimension_numbers<[1], [0], [0], [1], [0, 0, 1, 1], [], []>} : vector<16x45xf32>, vector<45x192xf32>, vector<16x192xf32> -> vector<16x192xf32>
    %3 = arith.mulf %2, %2 : vector<16x192xf32>
    %c0_3 = arith.constant 0 : index
    %c0_4 = arith.constant 0 : index
    %4 = vector.load %arg3[%c0_3, %c0_4] : memref<192x13xf32, #tpu.memory_space<vmem>>, vector<192x13xf32>
    %cst_5 = arith.constant dense<0.000000e+00> : vector<16x13xf32>
    %5 = tpu.matmul %3, %4, %cst_5 {dimension_numbers = #tpu.dot_dimension_numbers<[1], [0], [0], [1], [0, 0, 1, 1], [], []>} : vector<16x192xf32>, vector<192x13xf32>, vector<16x13xf32> -> vector<16x13xf32>
    %6 = vector.extract_strided_slice %0 {offsets = [0, 32], sizes = [16, 13], strides = [1, 1]} : vector<16x45xf32> to vector<16x13xf32>
    %c0_6 = arith.constant 0 : index
    %c0_7 = arith.constant 0 : index
    %7 = vector.load %arg4[%c0_6, %c0_7] : memref<1x13xf32, #tpu.memory_space<vmem>>, vector<1x13xf32>
    %8 = vector.broadcast %7 : vector<1x13xf32> to vector<16x13xf32>
    %9 = arith.addf %5, %8 : vector<16x13xf32>
    %10 = math.rsqrt %9 : vector<16x13xf32>
    %11 = arith.mulf %6, %10 : vector<16x13xf32>
    %c0_8 = arith.constant 0 : index
    %c0_9 = arith.constant 0 : index
    %12 = vector.load %arg5[%c0_8, %c0_9] : memref<13x196xf32, #tpu.memory_space<vmem>>, vector<13x196xf32>
    %cst_10 = arith.constant dense<0.000000e+00> : vector<16x196xf32>
    %13 = tpu.matmul %11, %12, %cst_10 {dimension_numbers = #tpu.dot_dimension_numbers<[1], [0], [0], [1], [0, 0, 1, 1], [], []>} : vector<16x13xf32>, vector<13x196xf32>, vector<16x196xf32> -> vector<16x196xf32>
    %14 = vector.extract_strided_slice %13 {offsets = [0, 0], sizes = [16, 192], strides = [1, 1]} : vector<16x196xf32> to vector<16x192xf32>
    %15 = arith.mulf %2, %14 : vector<16x192xf32>
    %c0_11 = arith.constant 0 : index
    %c0_12 = arith.constant 0 : index
    %16 = vector.load %arg6[%c0_11, %c0_12] : memref<1x192xf32, #tpu.memory_space<vmem>>, vector<1x192xf32>
    %17 = vector.broadcast %16 : vector<1x192xf32> to vector<16x192xf32>
    %18 = arith.addf %15, %17 : vector<16x192xf32>
    %cst_13 = arith.constant 0.000000e+00 : f32
    %19 = vector.broadcast %cst_13 : f32 to vector<16x192xf32>
    %20 = arith.maximumf %18, %19 : vector<16x192xf32>
    %c0_14 = arith.constant 0 : index
    %c0_15 = arith.constant 0 : index
    %21 = vector.load %arg7[%c0_14, %c0_15] : memref<192x4xf32, #tpu.memory_space<vmem>>, vector<192x4xf32>
    %cst_16 = arith.constant dense<0.000000e+00> : vector<16x4xf32>
    %22 = tpu.matmul %20, %21, %cst_16 {dimension_numbers = #tpu.dot_dimension_numbers<[1], [0], [0], [1], [0, 0, 1, 1], [], []>} : vector<16x192xf32>, vector<192x4xf32>, vector<16x4xf32> -> vector<16x4xf32>
    %23 = vector.extract_strided_slice %13 {offsets = [0, 192], sizes = [16, 4], strides = [1, 1]} : vector<16x196xf32> to vector<16x4xf32>
    %24 = arith.addf %22, %23 : vector<16x4xf32>
    %c0_17 = arith.constant 0 : index
    %c0_18 = arith.constant 0 : index
    %25 = vector.load %arg8[%c0_17, %c0_18] : memref<16x4xf32, #tpu.memory_space<vmem>>, vector<16x4xf32>
    tpu.vector_store %arg8[%c0_17, %c0_18], %24 {strides = array<i32>} : memref<16x4xf32, #tpu.memory_space<vmem>>, vector<16x4xf32>,
    return
  }
  func.func @transform_0(%arg0: i32) -> (i32, i32) {
    %c0_i32 = arith.constant 0 : i32
    %c0_i32_0 = arith.constant 0 : i32
    return %arg0, %c0_i32 : i32, i32
  }
  func.func @transform_1(%arg0: i32) -> (i32, i32) {
    %c0_i32 = arith.constant 0 : i32
    %c0_i32_0 = arith.constant 0 : i32
    %c0_i32_1 = arith.constant 0 : i32
    return %c0_i32, %c0_i32_0 : i32, i32
  }
  func.func @transform_2(%arg0: i32) -> (i32, i32) {
    %c0_i32 = arith.constant 0 : i32
    %c0_i32_0 = arith.constant 0 : i32
    %c0_i32_1 = arith.constant 0 : i32
    return %c0_i32, %c0_i32_0 : i32, i32
  }
  func.func @transform_3(%arg0: i32) -> (i32, i32) {
    %c0_i32 = arith.constant 0 : i32
    %c0_i32_0 = arith.constant 0 : i32
    %c0_i32_1 = arith.constant 0 : i32
    return %c0_i32, %c0_i32_0 : i32, i32
  }
  func.func @transform_4(%arg0: i32) -> (i32, i32) {
    %c0_i32 = arith.constant 0 : i32
    %c0_i32_0 = arith.constant 0 : i32
    %c0_i32_1 = arith.constant 0 : i32
    return %c0_i32, %c0_i32_0 : i32, i32
  }
  func.func @transform_5(%arg0: i32) -> (i32, i32) {
    %c0_i32 = arith.constant 0 : i32
    %c0_i32_0 = arith.constant 0 : i32
    %c0_i32_1 = arith.constant 0 : i32
    return %c0_i32, %c0_i32_0 : i32, i32
  }
  func.func @transform_6(%arg0: i32) -> (i32, i32) {
    %c0_i32 = arith.constant 0 : i32
    %c0_i32_0 = arith.constant 0 : i32
    %c0_i32_1 = arith.constant 0 : i32
    return %c0_i32, %c0_i32_0 : i32, i32
  }
  func.func @transform_7(%arg0: i32) -> (i32, i32) {
    %c0_i32 = arith.constant 0 : i32
    %c0_i32_0 = arith.constant 0 : i32
    return %arg0, %c0_i32 : i32, i32
  }
}

</mosaic_0001>

<bundles_post_ra>
// kernel: tpu_custom_call.1
= control target key start
LH: loop header
LB: loop body
LE: loop exit
PB: predicated region body
PF: predicated region fallthrough
CT: control target
= control target key end

     0   :  { %v617_v3 = vmov 0.0   ;;  %vm47_vm0 = vcmask 1044480   ;;  %vm618_vm1 = vmmov 1   ;;  %vm40_vm3 = vcmask 367616   ;;  %s620_s11 = smov 32   ;;  %s621_s12 = smov 96   ;;  %s945_s1 = inlined_call_operand.vmem [shape: f32[45,192], index: 1, kind: input, shape index: {}]   ;;  %s946_s2 = inlined_call_operand.vmem [shape: f32[192,13], index: 2, kind: input, shape index: {}]   ;;  %s947_s0 = inlined_call_operand.vmem [shape: f32[16,45], index: 0, kind: input, shape index: {}]   ;;  %s948_s3 = inlined_call_operand.vmem [shape: f32[1,13], index: 3, kind: input, shape index: {}]   ;;  %s949_s4 = inlined_call_operand.vmem [shape: f32[13,196], index: 4, kind: input, shape index: {}]   ;;  %s950_s6 = inlined_call_operand.vmem [shape: f32[192,4], index: 6, kind: input, shape index: {}]   ;;  %s951_s5 = inlined_call_operand.vmem [shape: f32[1,192], index: 5, kind: input, shape index: {}]   ;;  %s952_s7 = inlined_call_operand.vmem [shape: f32[16,4], index: 7, kind: output, shape index: {}]  }
   0x1   :  { %v29_v0 = vld [vmem:[%s945_s1 + $0x8] sm:$0xff]  ;;  %v31_v1 = vld [vmem:[%s945_s1 + $0x18] sm:$0xff]  ;;  %v28_v2 = vld [vmem:[%s945_s1] sm:$0xff]  ;;  %118 = vmatprep.mubr.f32.mxu1 %v617_v3  ;;  %345 = vmatprep.mubr.f32.mxu0 %v617_v3  ;;  %v619_v24 = vmov 0.0|0.0   ;;  %vm166_vm4 = vcmask 523264   ;;  %vm270_vm5 = vcmask 105472  }
   0x2   :  { %v515_v4 = vpack.c.bf16 %v31_v1, %v29_v0  ;;  %v30_v5 = vld [vmem:[%s945_s1 + $0x10] sm:$0xff]  ;;  %v33_v6 = vld [vmem:[%s945_s1 + $0x28] sm:$0xff]  ;;  %v35_v7 = vld [vmem:[%s945_s1 + $0x38] sm:$0xff]  ;;  %s622_s8 = smov 64   ;;  %vm495_vm6 = vcmask 31744  }
   0x3   :  { %v517_v8 = vpack.c.bf16 %v30_v5, %v28_v2  ;;  %v519_v9 = vpack.c.bf16 %v35_v7, %v33_v6  ;;  %v32_v10 = vld [vmem:[%s945_s1 + $0x20] sm:$0xff]  ;;  %v34_v11 = vld [vmem:[%s945_s1 + $0x30] sm:$0xff]  ;;  %v37_v12 = vld [vmem:[%s945_s1 + $0x48] sm:$0xff] }
   0x4   :  { %516 = vmatprep.subr.bf16.mxu1 %v515_v4  ;;  %v39_v13 = vld [vmem:[%s945_s1 + $0x58] sm:$0x1f]  ;;  %v521_v14 = vpack.c.bf16 %v34_v11, %v32_v10  ;;  %v36_v16 = vld [vmem:[%s945_s1 + $0x40] sm:$0xff]  ;;  %v38_v17 = vld [vmem:[%s945_s1 + $0x50] sm:$0x1f] }
   0x5   :  { %518 = vmatpush1.bf16.msra.mxu1 %v517_v8  ;;  %v523_v15 = vpack.c.bf16 %v39_v13, %v37_v12  ;;  %vm701_vm2 = vmpackc.low %vm47_vm0, %vm618_vm1  ;;  %v526_v19 = vpack.c.bf16 %v38_v17, %v36_v16  ;;  %v135_v20 = vld [vmem:[%s946_s2] sm:$0xff]  ;;  %v136_v21 = vld [vmem:[%s946_s2 + $0x8] sm:$0xff] }
   0x6   :  { %520 = vmatprep.subr.bf16.mxu1 %v519_v9  ;;  %v718_v22 = vld [vmem:[%s947_s0] sm:$0xff]  ;;  %v530_v23 = vpack.c.bf16 %v136_v21, %v135_v20  ;;  %v137_v25 = vld [vmem:[%s946_s2 + $0x10] sm:$0xff]  ;;  %v138_v26 = vld [vmem:[%s946_s2 + $0x18] sm:$0xff] }
   0x7   :  { %v732_v27 = vld [vmem:[%s947_s0 + $0x8] sm:$0xff]  ;;  %v533_v28 = vpack.c.bf16 %v138_v26, %v137_v25  ;;  %v139_v29 = vld [vmem:[%s946_s2 + $0x20] sm:$0xff]  ;;  %v141_v32 = vld [vmem:[%s946_s2 + $0x30] sm:$0xff] }
   0x8   :  { %v140_v30 = vld [vmem:[%s946_s2 + $0x28] sm:$0xff]  ;;  %v142_v33 = vld [vmem:[%s946_s2 + $0x38] sm:$0xff]  ;;  %v143_v35 = vld [vmem:[%s946_s2 + $0x40] sm:$0xff] }
   0x9   :  { %522 = vmatpush1.bf16.msra.mxu1 %v521_v14  ;;  %v536_v31 = vpack.c.bf16 %v140_v30, %v139_v29  ;;  %v539_v34 = vpack.c.bf16 %v142_v33, %v141_v32  ;;  %v144_v36 = vld [vmem:[%s946_s2 + $0x48] sm:$0xff]  ;;  %v145_v38 = vld [vmem:[%s946_s2 + $0x50] sm:$0xff]  ;;  %v146_v39 = vld [vmem:[%s946_s2 + $0x58] sm:$0xff] }
   0xa   :  { %525 = vmatprep.subr.msk.bf16.mxu1 %vm701_vm2, %v523_v15  ;;  %v542_v37 = vpack.c.bf16 %v144_v36, %v143_v35  ;;  %v545_v40 = vpack.c.bf16 %v146_v39, %v145_v38  ;;  %v147_v41 = vld [vmem:[%s946_s2 + $0x60] sm:$0xff]  ;;  %v148_v42 = vld [vmem:[%s946_s2 + $0x68] sm:$0xff]  ;;  %v149_v44 = vld [vmem:[%s946_s2 + $0x70] sm:$0xff] }
   0xb   :  { %v548_v43 = vpack.c.bf16 %v148_v42, %v147_v41  ;;  %v150_v45 = vld [vmem:[%s946_s2 + $0x78] sm:$0xff]  ;;  %v151_v47 = vld [vmem:[%s946_s2 + $0x80] sm:$0xff]  ;;  %v152_v48 = vld [vmem:[%s946_s2 + $0x88] sm:$0xff] }
   0xc   :  { %v551_v46 = vpack.c.bf16 %v150_v45, %v149_v44  ;;  %v554_v49 = vpack.c.bf16 %v152_v48, %v151_v47  ;;  %v153_v50 = vld [vmem:[%s946_s2 + $0x90] sm:$0xff]  ;;  %v154_v51 = vld [vmem:[%s946_s2 + $0x98] sm:$0xff]  ;;  %v155_v53 = vld [vmem:[%s946_s2 + $0xa0] sm:$0xff] }
   0xd   :  { %528 = vmatpush1.bf16.msk.msra.mxu1 %vm701_vm2, %v526_v19  ;;  %v557_v52 = vpack.c.bf16 %v154_v51, %v153_v50  ;;  %v156_v54 = vld [vmem:[%s946_s2 + $0xa8] sm:$0xff]  ;;  %v157_v56 = vld [vmem:[%s946_s2 + $0xb0] sm:$0xff]  ;;  %v158_v57 = vld [vmem:[%s946_s2 + $0xb8] sm:$0xff] }
   0xe   :  { %529 = vmatprep.subr.bf16.mxu1 %v619_v24  ;;  %v560_v55 = vpack.c.bf16 %v156_v54, %v155_v53  ;;  %v563_v58 = vpack.c.bf16 %v158_v57, %v157_v56  ;;  %v506_v4 = vld [vmem:[%s948_s3] ss:$0 sm:$0xff]  ;;  %v261_v11 = vld [vmem:[%s949_s4 + $0x8] sm:$0xff]  ;;  %v263_v12 = vld [vmem:[%s949_s4 + $0x18] sm:$0x1f] }
   0xf   :  { %v260_v13 = vld [vmem:[%s949_s4] sm:$0xff]  ;;  %v565_v14 = vpack.c.bf16 %v263_v12, %v261_v11  ;;  %v262_v15 = vld [vmem:[%s949_s4 + $0x10] sm:$0x1f]  ;;  %v383_v26 = vld [vmem:[%s950_s6 + $0x8] sm:$0xff] }
  0x10   :  { %504 = vmatmul.mubr.msk.f32.vlgmr.msra.gmra.mrb[0].mxu1 %vm40_vm3, %v718_v22  ;;  %v568_v16 = vpack.c.bf16 %v262_v15, %v260_v13  ;;  %v382_v18 = vld [vmem:[%s950_s6] sm:$0xff]  ;;  %v385_v29 = vld [vmem:[%s950_s6 + $0x18] sm:$0xff]  ;;  %v387_v32 = vld [vmem:[%s950_s6 + $0x28] sm:$0xff] }
  0x11   :  { %124 = vmatprep.mubr.f32.mxu1 %v617_v3  ;;  %531 = vmatpush1.bf16.msra.mxu1 %v530_v23  ;;  %v389_v35 = vld [vmem:[%s950_s6 + $0x38] sm:$0xff]  ;;  %v391_v38 = vld [vmem:[%s950_s6 + $0x48] sm:$0xff] }
  0x12   :  { %532 = vmatprep.subr.bf16.mxu1 %v619_v24  ;;  %567 = vmatprep.subr.msk.bf16.mxu0 %vm701_vm2, %v565_v14  ;;  %v393_v41 = vld [vmem:[%s950_s6 + $0x58] sm:$0xff]  ;;  %v395_v44 = vld [vmem:[%s950_s6 + $0x68] sm:$0xff] }
  0x13   :  { %570 = vmatpush1.bf16.msk.msra.mxu0 %vm701_vm2, %v568_v16  ;;  %v397_v47 = vld [vmem:[%s950_s6 + $0x78] sm:$0xff]  ;;  %v399_v50 = vld [vmem:[%s950_s6 + $0x88] sm:$0xff] }
  0x14   :  { %505 = vmatmul.mubr.msk.f32.gmra.mrb[2].mxu1 %vm40_vm3, %v732_v27  ;;  %571 = vmatprep.subr.bf16.mxu0 %v619_v24  ;;  %v401_v53 = vld [vmem:[%s950_s6 + $0x98] sm:$0xff]  ;;  %v403_v56 = vld [vmem:[%s950_s6 + $0xa8] sm:$0xff] }
  0x15   :  { %534 = vmatpush1.bf16.msra.mxu1 %v533_v28  ;;  %v572_v28 = vpack.c.bf16 %v383_v26, %v382_v18 }
  0x16   :  { %535 = vmatprep.subr.bf16.mxu1 %v619_v24 }
  0x19   :  { %537 = vmatpush1.bf16.msra.mxu1 %v536_v31  ;;  %v386_v31 = vld [vmem:[%s950_s6 + $0x20] sm:$0xff] }
  0x1a   :  { %538 = vmatprep.subr.bf16.mxu1 %v619_v24 }
  0x1d   :  { %540 = vmatpush1.bf16.msra.mxu1 %v539_v34  ;;  %v578_v34 = vpack.c.bf16 %v387_v32, %v386_v31 }
  0x1e   :  { %541 = vmatprep.subr.bf16.mxu1 %v619_v24 }
  0x21   :  { %543 = vmatpush1.bf16.msra.mxu1 %v542_v37  ;;  %v390_v37 = vld [vmem:[%s950_s6 + $0x40] sm:$0xff] }
  0x22   :  { %544 = vmatprep.subr.bf16.mxu1 %v619_v24  ;;  %v584_v39 = vpack.c.bf16 %v391_v38, %v390_v37 }
  0x25   :  { %546 = vmatpush1.bf16.msra.mxu1 %v545_v40  ;;  %v392_v40 = vld [vmem:[%s950_s6 + $0x50] sm:$0xff] }
  0x26   :  { %547 = vmatprep.subr.bf16.mxu1 %v619_v24  ;;  %v587_v42 = vpack.c.bf16 %v393_v41, %v392_v40 }
  0x29   :  { %549 = vmatpush1.bf16.msra.mxu1 %v548_v43  ;;  %v394_v43 = vld [vmem:[%s950_s6 + $0x60] sm:$0xff] }
  0x2a   :  { %550 = vmatprep.subr.bf16.mxu1 %v619_v24  ;;  %v590_v45 = vpack.c.bf16 %v395_v44, %v394_v43 }
  0x2d   :  { %552 = vmatpush1.bf16.msra.mxu1 %v551_v46  ;;  %v396_v46 = vld [vmem:[%s950_s6 + $0x70] sm:$0xff] }
  0x2e   :  { %553 = vmatprep.subr.bf16.mxu1 %v619_v24  ;;  %v593_v48 = vpack.c.bf16 %v397_v47, %v396_v46 }
  0x31   :  { %555 = vmatpush1.bf16.msra.mxu1 %v554_v49  ;;  %v398_v49 = vld [vmem:[%s950_s6 + $0x80] sm:$0xff] }
  0x32   :  { %556 = vmatprep.subr.bf16.mxu1 %v619_v24  ;;  %v596_v51 = vpack.c.bf16 %v399_v50, %v398_v49 }
  0x35   :  { %558 = vmatpush1.bf16.msra.mxu1 %v557_v52  ;;  %v400_v52 = vld [vmem:[%s950_s6 + $0x90] sm:$0xff] }
  0x36   :  { %559 = vmatprep.subr.bf16.mxu1 %v619_v24  ;;  %v599_v54 = vpack.c.bf16 %v401_v53, %v400_v52 }
  0x39   :  { %561 = vmatpush1.bf16.msra.mxu1 %v560_v55  ;;  %v402_v55 = vld [vmem:[%s950_s6 + $0xa0] sm:$0xff] }
  0x3a   :  { %562 = vmatprep.subr.bf16.mxu1 %v619_v24  ;;  %v602_v57 = vpack.c.bf16 %v403_v56, %v402_v55 }
  0x3d   :  { %564 = vmatpush1.bf16.msra.mxu1 %v563_v58  ;;  %v404_v58 = vld [vmem:[%s950_s6 + $0xb0] sm:$0xff] }
  0xe3   :  { %v806_v59 = vpop.f32.mrb[0].mxu1 }
  0xe4   :  { %v808_v60 = vpop.f32.mrb[1].mxu1  ;;  %v131_v62 = vmul.f32 %v806_v59, %v806_v59 }
  0xe5   :  { %v132_v61 = vmul.f32 %v808_v60, %v808_v60 }
  0xe7   :  { %v814_v63 = vpop.f32.mrb[2].mxu1  ;;  %507 = vmatprep.mubr.msk.f32.mxu1 %vm166_vm4, %v132_v61  ;;  %v405_v61 = vld [vmem:[%s950_s6 + $0xb8] sm:$0xff] }
  0xe8   :  { %v817_v0 = vpop.f32.mrb[3].mxu1  ;;  %238 = vmatmul.mubr.f32.vlgmr.msra.gmra.mrb[4].mxu1 %v131_v62  ;;  %v133_v2 = vmul.f32 %v814_v63, %v814_v63  ;;  %v605_v62 = vpack.c.bf16 %v405_v61, %v404_v58 }
  0xe9   :  { %v134_v1 = vmul.f32 %v817_v0, %v817_v0 }
  0xeb   :  { %508 = vmatprep.mubr.msk.f32.mxu1 %vm166_vm4, %v134_v1  ;;  %v364_v1 = vlaneseq }
  0xec   :  { %243 = vmatmul.mubr.f32.gmra.mrb[6].mxu1 %v133_v2 }
  0xed   :  { %v365_v2 = vshrl.u32 %v364_v1, 7 }
 0x1bb   :  { %v239_v5 = vpop.f32.mrb[4].mxu1 }
 0x1bc   :  { %v240_v6 = vadd.f32 %v506_v4, %v239_v5  ;;  %v241_v7 = vpop.f32.mrb[5].mxu1  ;;  %v362_v5 = vld [vmem:[%s951_s5] sm:$0x3] }
 0x1be   :  { %613 = vrsqrt.f32 %v240_v6  ;;  %v370_v6 = vsub.s32 1, %v365_v2 }
 0x1bf   :  { %v244_v8 = vpop.f32.mrb[6].mxu1 }
 0x1c0   :  { %v245_v9 = vadd.f32 %v506_v4, %v244_v8  ;;  %v246_v10 = vpop.f32.mrb[7].mxu1  ;;  %v366_v4 = vsub.s32 0, %v365_v2  ;;  %v371_v8 = vrot.slane %v362_v5, %v370_v6 }
 0x1c2   :  { %615 = vrsqrt.f32 %v245_v9  ;;  %v367_v7 = vrot.slane %v362_v5, %v366_v4 }
 0x1c8   :  { %v614_v17 = vpop.eup %613 }
 0x1c9   :  { %252 = vrot.lane.b32.xlu0 %v614_v17, %s620_s11 }
 0x1cc   :  { %v616_v19 = vpop.eup %615 }
 0x1cd   :  { %254 = vrot.lane.b32.xlu0 %v616_v19, %s620_s11 }
 0x23b   :  { %v253_v20 = vpop.permute.xlu0 %252 }
 0x23c   :  { %v258_v21 = vmul.f32 %v253_v20, %v718_v22  ;;  %v384_v22 = vld [vmem:[%s950_s6 + $0x10] sm:$0xff] }
 0x23d   :  { %v575_v30 = vpack.c.bf16 %v385_v29, %v384_v22 }
 0x23e   :  { %266 = vrot.lane.b32.xlu1 %v258_v21, %s621_s12 }
 0x23f   :  { %v255_v23 = vpop.permute.xlu0 %254 }
 0x240   :  { %v259_v25 = vmul.f32 %v255_v23, %v732_v27 }
 0x242   :  { %268 = vrot.lane.b32.xlu1 %v259_v25, %s621_s12 }
 0x2b0   :  { %v267_v27 = vpop.permute.xlu1 %266 }
 0x2b1   :  { %511 = vmatmul.mubr.msk.f32.vlgmr.msra.gmra.mrb[0].mxu0 %vm270_vm5, %v267_v27 }
 0x2b2   :  { %351 = vmatprep.mubr.f32.mxu0 %v617_v3  ;;  %573 = vmatpush1.bf16.msra.mxu0 %v572_v28  ;;  %v388_v3 = vld [vmem:[%s950_s6 + $0x30] sm:$0xff] }
 0x2b3   :  { %574 = vmatprep.subr.bf16.mxu0 %v619_v24  ;;  %v581_v36 = vpack.c.bf16 %v389_v35, %v388_v3 }
 0x2b4   :  { %v269_v33 = vpop.permute.xlu1 %268 }
 0x2b5   :  { %512 = vmatmul.mubr.msk.f32.gmra.mrb[2].mxu0 %vm270_vm5, %v269_v33 }
 0x2b6   :  { %576 = vmatpush1.bf16.msra.mxu0 %v575_v30 }
 0x2b7   :  { %577 = vmatprep.subr.bf16.mxu0 %v619_v24 }
 0x2ba   :  { %579 = vmatpush1.bf16.msra.mxu0 %v578_v34 }
 0x2bb   :  { %580 = vmatprep.subr.bf16.mxu0 %v619_v24 }
 0x2be   :  { %582 = vmatpush1.bf16.msra.mxu0 %v581_v36 }
 0x2bf   :  { %583 = vmatprep.subr.bf16.mxu0 %v619_v24 }
 0x2c2   :  { %585 = vmatpush1.bf16.msra.mxu0 %v584_v39 }
 0x2c3   :  { %586 = vmatprep.subr.bf16.mxu0 %v619_v24 }
 0x2c6   :  { %588 = vmatpush1.bf16.msra.mxu0 %v587_v42 }
 0x2c7   :  { %589 = vmatprep.subr.bf16.mxu0 %v619_v24 }
 0x2ca   :  { %591 = vmatpush1.bf16.msra.mxu0 %v590_v45 }
 0x2cb   :  { %592 = vmatprep.subr.bf16.mxu0 %v619_v24 }
 0x2ce   :  { %594 = vmatpush1.bf16.msra.mxu0 %v593_v48 }
 0x2cf   :  { %595 = vmatprep.subr.bf16.mxu0 %v619_v24 }
 0x2d2   :  { %597 = vmatpush1.bf16.msra.mxu0 %v596_v51 }
 0x2d3   :  { %598 = vmatprep.subr.bf16.mxu0 %v619_v24 }
 0x2d6   :  { %600 = vmatpush1.bf16.msra.mxu0 %v599_v54 }
 0x2d7   :  { %601 = vmatprep.subr.bf16.mxu0 %v619_v24 }
 0x2da   :  { %603 = vmatpush1.bf16.msra.mxu0 %v602_v57 }
 0x2db   :  { %604 = vmatprep.subr.bf16.mxu0 %v619_v24 }
 0x2de   :  { %606 = vmatpush1.bf16.msra.mxu0 %v605_v62 }
 0x384   :  { %v347_v24 = vpop.f32.mrb[0].mxu0 }
 0x385   :  { %v358_v9 = vmul.f32 %v347_v24, %v806_v59  ;;  %v349_v10 = vpop.f32.mrb[1].mxu0 }
 0x386   :  { %v359_v11 = vmul.f32 %v349_v10, %v808_v60  ;;  %408 = vrot.lane.b32.xlu0 %v349_v10, %s622_s8 }
 0x387   :  { %v374_v12 = vadd.f32 %v367_v7, %v358_v9 }
 0x388   :  { %v375_v13 = vadd.f32 %v371_v8, %v359_v11  ;;  %v353_v14 = vpop.f32.mrb[2].mxu0 }
 0x389   :  { %v360_v15 = vmul.f32 %v353_v14, %v814_v63  ;;  %v355_v16 = vpop.f32.mrb[3].mxu0  ;;  %v378_v20 = vmax.f32 %v374_v12, 0.0 }
 0x38a   :  { %v379_v17 = vmax.f32 %v375_v13, 0.0  ;;  %v361_v19 = vmul.f32 %v355_v16, %v817_v0  ;;  %410 = vrot.lane.b32.xlu1 %v355_v16, %s622_s8 }
 0x38b   :  { %v376_v21 = vadd.f32 %v367_v7, %v360_v15 }
 0x38c   :  { %v377_v23 = vadd.f32 %v371_v8, %v361_v19  ;;  %513 = vmatprep.mubr.msk.f32.mxu0 %vm166_vm4, %v379_v17 }
 0x38d   :  { %485 = vmatmul.mubr.f32.vlgmr.msra.gmra.mrb[4].mxu0 %v378_v20  ;;  %v380_v60 = vmax.f32 %v376_v21, 0.0 }
 0x38e   :  { %v381_v59 = vmax.f32 %v377_v23, 0.0 }
 0x390   :  { %514 = vmatprep.mubr.msk.f32.mxu0 %vm166_vm4, %v381_v59 }
 0x391   :  { %490 = vmatmul.mubr.f32.gmra.mrb[6].mxu0 %v380_v60 }
 0x3f8   :  { %v409_v25 = vpop.permute.xlu0 %408 }
 0x3fc   :  { %v411_v0 = vpop.permute.xlu1 %410 }
 0x460   :  { %v486_v18 = vpop.f32.mrb[4].mxu0 }
 0x461   :  { %v487_v63 = vadd.f32 %v486_v18, %v409_v25  ;;  %v488_v26 = vpop.f32.mrb[5].mxu0 }
 0x463   :  { %496 = vst.msk [vmem:[%s952_s7] sm:$0xff] %vm495_vm6, %v487_v63 }
 0x464   :  { %v491_v28 = vpop.f32.mrb[6].mxu0 }
 0x465   :  { %v492_v22 = vadd.f32 %v491_v28, %v411_v0  ;;  %v493_v29 = vpop.f32.mrb[7].mxu0 }
 0x467   :  { %497 = vst.msk [vmem:[%s952_s7 + $0x8] sm:$0xff] %vm495_vm6, %v492_v22 }

</bundles_post_ra>
